<compile_context>
chip_gen: v7x
topology: tpu7x:2x2x1
jax: 0.10.0
libtpu: 0.0.40
codegen_flags: <defaults>
</compile_context>

<pallas_src>
import functools

import jax
import jax.numpy as jnp
from jax import lax
from jax.experimental import pallas as pl
from jax.experimental.pallas import tpu as pltpu


# --------------------------------------------------------------------------
# Fused kernel: the whole network for ONE block of Bblk batch items.
# --------------------------------------------------------------------------
def _fused_periodic_cnn_kernel(*refs, metas, H, W, bblk):
    """refs = (x_ref, w_ref0, b_ref0, ..., w_refL-1, b_refL-1, o_ref, patch_ref).

    x_ref:     (C0, Bblk*S)        lane-dense activations, w-major flat spatial
                                   (per-item flat index = w*H + h)
    w_refi:    (Cout_i, kkc_pad_i) pre-packed conv weights (zero-padded columns)
    b_refi:    (Cout_i, 1)
    o_ref:     (C_last, Bblk*S)
    patch_ref: (max kkc_pad, Bblk*S) f32 VMEM im2col slab, reused across layers.
    """
    x_ref = refs[0]
    o_ref = refs[-2]
    patch_ref = refs[-1]
    wb_refs = refs[1:-2]
    S = H * W

    # h-coordinate of every flat position inside one item stripe (flat = w*H+h).
    flat_idx = lax.broadcasted_iota(jnp.int32, (1, S), 1)
    if (H & (H - 1)) == 0:                       # power-of-two fast path
        h_idx = flat_idx & (H - 1)
    else:
        h_idx = flat_idx % H

    # Hoisted boolean keep-masks, one per distinct nonzero vertical offset dh.
    # Masking the SOURCE rows commutes with the flat roll (the wrapped,
    # invalid destination rows of a dh-tap read exactly these source rows), so
    # every tap below is a single pltpu.roll of the right pre-masked copy.
    dh_all = sorted({kh - (K - 1) // 2 for (K, _, _, _, _) in metas
                     for kh in range(K) if kh != (K - 1) // 2})
    keep = {dh: (h_idx >= dh) if dh > 0 else (h_idx < H + dh) for dh in dh_all}

    x = x_ref[...].astype(jnp.float32)                       # (C0, Bblk*S)

    for li, (K, cin, cout, kkc_pad, apply_elu) in enumerate(metas):
        w_ref = wb_refs[2 * li]
        b_ref = wb_refs[2 * li + 1]
        p = (K - 1) // 2
        kkc = K * K * cin

        # --- im2col slab fill: one lane stripe per batch item so the periodic
        # --- W wrap (flat roll) never crosses batch boundaries.
        for b in range(bblk):
            xb = x[:, b * S:(b + 1) * S]                      # (cin, S)
            masked = {0: xb}
            for dh in range(-p, p + 1):
                if dh != 0:
                    masked[dh] = jnp.where(keep[dh], xb, 0.0)
            for kh in range(K):
                dh = kh - p
                for kw in range(K):
                    dw = kw - p
                    t = kh * K + kw
                    shift = (-(dh + dw * H)) % S
                    src = masked[dh]
                    sh = pltpu.roll(src, shift, axis=1) if shift else src
                    patch_ref[t * cin:(t + 1) * cin, b * S:(b + 1) * S] = sh

        # Zero the sublane-alignment padding rows (also guards against
        # uninitialized scratch garbage on first use: garbage * 0 could be NaN).
        if kkc_pad > kkc:
            patch_ref[kkc:kkc_pad, :] = jnp.zeros(
                (kkc_pad - kkc, bblk * S), jnp.float32)

        # --- one MXU matmul per layer over the whole batch block.
        y = jnp.dot(w_ref[...].astype(jnp.float32), patch_ref[0:kkc_pad, :],
                    preferred_element_type=jnp.float32)       # (Cout, Bblk*S)
        y = y + b_ref[...].astype(jnp.float32)                # bias (Cout, 1)

        if apply_elu:
            # ELU(alpha=1): exp(v)-1 with v = min(y,0) <= 0 (single EUP op;
            # abs err vs expm1 ~1e-7, negligible for f32 activations).
            neg = jnp.minimum(y, 0.0)
            y = jnp.where(y > 0, y, jnp.exp(neg) - 1.0)

        x = y

    o_ref[...] = x.astype(o_ref.dtype)


# --------------------------------------------------------------------------
# PeriodicCNN forward: NCHW in, NCHW out — one fused pallas_call.
# --------------------------------------------------------------------------
def periodic_cnn_forward(params, x_nchw, *, target_steps=2, max_block_batch=32):
    N, C0, H, W = x_nchw.shape
    S = H * W

    # ---- pack weights, build per-layer metadata -----------------------------
    metas = []
    w_args = []
    wb_specs = []
    cin = C0
    for i, (w, b) in enumerate(params):
        K = w.shape[0]
        assert K % 2 == 1, "PeriodicConv2D translation assumes an odd kernel size"
        cout = w.shape[-1]
        kkc = K * K * cin
        kkc_pad = -(-kkc // 8) * 8                  # sublane-align the MXU rhs
        # (K, K, Cin, Cout) -> (Cout, K*K*Cin); row order (kh*K + kw)*Cin + c,
        # matching the kernel's im2col row order; zero-pad to kkc_pad columns.
        w2 = jnp.transpose(w, (3, 0, 1, 2)).reshape(cout, kkc)
        if kkc_pad > kkc:
            w2 = jnp.pad(w2, ((0, 0), (0, kkc_pad - kkc)))
        b2 = b.reshape(cout, 1)
        w_args += [w2, b2]
        wb_specs += [pl.BlockSpec((cout, kkc_pad), lambda n: (0, 0)),
                     pl.BlockSpec((cout, 1), lambda n: (0, 0))]
        metas.append((K, cin, cout, kkc_pad, i < len(params) - 1))  # ELU all but last
        cin = cout
    c_last = cin
    max_kkc_pad = max(m[3] for m in metas)

    # ---- batch blocking ------------------------------------------------------
    # Fold Bblk batch items into each grid step (amortizes the ~0.35 us/step +
    # DMA-setup overhead), but keep >= 2 (even) "parallel" steps when N >= 2 so
    # both v7x TensorCores stay evenly fed.
    if N <= 1:
        bblk = 1
    else:
        steps = max(target_steps, -(-N // max_block_batch))
        if steps % 2:
            steps += 1
        bblk = -(-N // steps)
    steps = -(-N // bblk)
    n_pad = steps * bblk

    # ---- lane-dense (C, N*S) layout, w-major spatial flatten ----------------
    # flat = n*S + w*H + h: the periodic W wrap is a single flat-axis roll
    # inside each item's lane stripe.
    x_cs = jnp.transpose(x_nchw, (1, 0, 3, 2)).reshape(C0, N * S)
    if n_pad != N:
        x_cs = jnp.pad(x_cs, ((0, 0), (0, (n_pad - N) * S)))

    kernel = functools.partial(
        _fused_periodic_cnn_kernel, metas=tuple(metas), H=H, W=W, bblk=bblk)

    flops = 2 * sum(co * K * K * ci for (K, ci, co, _, _) in metas) * S * n_pad
    transcendentals = sum(co for (_, _, co, _, elu) in metas if elu) * S * n_pad
    bytes_accessed = (
        x_cs.size * x_cs.dtype.itemsize
        + c_last * n_pad * S * x_nchw.dtype.itemsize
        + sum(a.size * a.dtype.itemsize for a in w_args))

    out_cs = pl.pallas_call(
        kernel,
        out_shape=jax.ShapeDtypeStruct((c_last, n_pad * S), x_nchw.dtype),
        grid=(steps,),
        in_specs=[pl.BlockSpec((C0, bblk * S), lambda n: (0, n))] + wb_specs,
        out_specs=pl.BlockSpec((c_last, bblk * S), lambda n: (0, n)),
        scratch_shapes=[pltpu.VMEM((max_kkc_pad, bblk * S), jnp.float32)],
        compiler_params=pltpu.CompilerParams(
            dimension_semantics=("parallel",)),       # batch blocks -> both TCs
        cost_estimate=pl.CostEstimate(
            flops=flops, transcendentals=transcendentals,
            bytes_accessed=bytes_accessed),
    )(x_cs, *w_args)

    # (C, N*S) w-major -> (C, N, W, H) -> NCHW.  Tiny layout plumbing.
    out = out_cs[:, :N * S].reshape(c_last, N, W, H)
    return jnp.transpose(out, (1, 0, 3, 2))


# --------------------------------------------------------------------------
# Parameter construction (weights stored HWIO: (K, K, Cin, Cout)).
# --------------------------------------------------------------------------
def init_periodic_cnn_params(key, filters, kernels, input_channels):
    chans = [input_channels] + list(filters)
    params = []
    for k, cin, cout in zip(kernels, chans[:-1], chans[1:]):
        key, wk, bk = jax.random.split(key, 3)
        fan_in = cin * k * k
        scale = 1.0 / jnp.sqrt(jnp.float32(fan_in))
        w = jax.random.uniform(wk, (k, k, cin, cout), jnp.float32, -scale, scale)
        b = jax.random.uniform(bk, (cout,), jnp.float32, -scale, scale)
        params.append((w, b))
    return params


# --------------------------------------------------------------------------
# Pure-JAX reference (correctness check only).
# --------------------------------------------------------------------------
def _periodic_pad_nhwc(x, p):
    if p == 0:
        return x
    x = jnp.concatenate([x[:, :, -p:, :], x, x[:, :, :p, :]], axis=2)  # wrap W
    x = jnp.pad(x, ((0, 0), (p, p), (0, 0), (0, 0)))                   # zero H
    return x


def _reference_forward(params, x_nchw):
    x = jnp.transpose(x_nchw, (0, 2, 3, 1))
    n_layers = len(params)
    for i, (w, b) in enumerate(params):
        k = w.shape[0]
        p = (k - 1) // 2
        xp = _periodic_pad_nhwc(x, p)
        y = lax.conv_general_dilated(
            xp, w, window_strides=(1, 1), padding="VALID",
            dimension_numbers=("NHWC", "HWIO", "NHWC"),
            precision=lax.Precision.HIGHEST)
        y = y + b[None, None, None, :]
        if i < n_layers - 1:
            y = jax.nn.elu(y)
        x = y
    return jnp.transpose(x, (0, 3, 1, 2))


if __name__ == "__main__":
    # PeriodicCNN(filters=[8, 8, 4], kernels=[3, 3, 3], input_channels=4)
    # input x: (batch=2, channels=4, H=16, W=16)  [NCHW, like PyTorch]
    filters = [8, 8, 4]
    kernels = [3, 3, 3]
    input_channels = 4

    key = jax.random.PRNGKey(0)
    key, pkey, xkey = jax.random.split(key, 3)

    params = init_periodic_cnn_params(pkey, filters, kernels, input_channels)
    x = jax.random.normal(xkey, (2, input_channels, 16, 16), jnp.float32)

    fwd = jax.jit(periodic_cnn_forward)
    out = jax.block_until_ready(fwd(params, x))

    ref = jax.block_until_ready(_reference_forward(params, x))
    assert out.shape == (2, filters[-1], 16, 16), out.shape
    max_err = float(jnp.max(jnp.abs(out - ref)))
    assert jnp.allclose(out, ref, atol=1e-4, rtol=1e-4), max_err

    print("KERNEL_OK")
</pallas_src>

<mosaic_0001>
module attributes {stable_mosaic.version = 11 : i64} {
  func.func @_fused_periodic_cnn_kernel(%arg0: i32, %arg1: memref<4x256xf32, #tpu.memory_space<vmem>>, %arg2: memref<8x40xf32, #tpu.memory_space<vmem>>, %arg3: memref<8x1xf32, #tpu.memory_space<vmem>>, %arg4: memref<8x72xf32, #tpu.memory_space<vmem>>, %arg5: memref<8x1xf32, #tpu.memory_space<vmem>>, %arg6: memref<4x72xf32, #tpu.memory_space<vmem>>, %arg7: memref<4x1xf32, #tpu.memory_space<vmem>>, %arg8: memref<4x256xf32, #tpu.memory_space<vmem>>, %arg9: memref<72x256xf32, #tpu.memory_space<vmem>>) attributes {dimension_semantics = [#tpu.dimension_semantics<parallel>], iteration_bounds = array<i64: 2>, scalar_prefetch = 0 : i64, scratch_operands = 1 : i64, tpu.core_type = #tpu.core_type<tc>, window_params = [{transform_indices = @transform_0, window_bounds = array<i64: 4, 256>}, {pipeline_mode = #tpu.pipeline_mode<synchronous>, transform_indices = @transform_1, window_bounds = array<i64: 8, 40>}, {pipeline_mode = #tpu.pipeline_mode<synchronous>, transform_indices = @transform_2, window_bounds = array<i64: 8, 1>}, {pipeline_mode = #tpu.pipeline_mode<synchronous>, transform_indices = @transform_3, window_bounds = array<i64: 8, 72>}, {pipeline_mode = #tpu.pipeline_mode<synchronous>, transform_indices = @transform_4, window_bounds = array<i64: 8, 1>}, {pipeline_mode = #tpu.pipeline_mode<synchronous>, transform_indices = @transform_5, window_bounds = array<i64: 4, 72>}, {pipeline_mode = #tpu.pipeline_mode<synchronous>, transform_indices = @transform_6, window_bounds = array<i64: 4, 1>}, {transform_indices = @transform_7, window_bounds = array<i64: 4, 256>}]} {
    %0 = tpu.iota {dimensions = array<i32: 1>} : vector<1x256xi32>
    %c15_i32 = arith.constant 15 : i32
    %1 = vector.broadcast %c15_i32 : i32 to vector<1x256xi32>
    %2 = arith.andi %0, %1 : vector<1x256xi32>
    %c15_i32_0 = arith.constant 15 : i32
    %3 = vector.broadcast %c15_i32_0 : i32 to vector<1x256xi32>
    %4 = arith.cmpi slt, %2, %3 : vector<1x256xi32>
    %c1_i32 = arith.constant 1 : i32
    %5 = vector.broadcast %c1_i32 : i32 to vector<1x256xi32>
    %6 = arith.cmpi sge, %2, %5 : vector<1x256xi32>
    %c0 = arith.constant 0 : index
    %c0_1 = arith.constant 0 : index
    %7 = vector.load %arg1[%c0, %c0_1] : memref<4x256xf32, #tpu.memory_space<vmem>>, vector<4x256xf32>
    %cst = arith.constant 0.000000e+00 : f32
    %8 = vector.shape_cast %4 : vector<1x256xi1> to vector<1x256xi1>
    %9 = vector.broadcast %8 : vector<1x256xi1> to vector<4x256xi1>
    %10 = vector.broadcast %cst : f32 to vector<4x256xf32>
    %11 = arith.select %9, %7, %10 : vector<4x256xi1>, vector<4x256xf32>
    %cst_2 = arith.constant 0.000000e+00 : f32
    %12 = vector.shape_cast %6 : vector<1x256xi1> to vector<1x256xi1>
    %13 = vector.broadcast %12 : vector<1x256xi1> to vector<4x256xi1>
    %14 = vector.broadcast %cst_2 : f32 to vector<4x256xf32>
    %15 = arith.select %13, %7, %14 : vector<4x256xi1>, vector<4x256xf32>
    %c17_i32 = arith.constant 17 : i32
    %16 = tpu.dynamic_rotate %11 by %c17_i32 dim 1 : vector<4x256xf32>, i32 -> vector<4x256xf32>
    %c0_3 = arith.constant 0 : index
    %c0_4 = arith.constant 0 : index
    %17 = vector.load %arg9[%c0_3, %c0_4] : memref<72x256xf32, #tpu.memory_space<vmem>>, vector<4x256xf32>
    tpu.vector_store %arg9[%c0_3, %c0_4], %16 {strides = array<i32>} : memref<72x256xf32, #tpu.memory_space<vmem>>, vector<4x256xf32>,
    %c1_i32_5 = arith.constant 1 : i32
    %18 = tpu.dynamic_rotate %11 by %c1_i32_5 dim 1 : vector<4x256xf32>, i32 -> vector<4x256xf32>
    %c4 = arith.constant 4 : index
    %c0_6 = arith.constant 0 : index
    %19 = vector.load %arg9[%c4, %c0_6] : memref<72x256xf32, #tpu.memory_space<vmem>>, vector<4x256xf32>
    tpu.vector_store %arg9[%c4, %c0_6], %18 {strides = array<i32>} : memref<72x256xf32, #tpu.memory_space<vmem>>, vector<4x256xf32>,
    %c241_i32 = arith.constant 241 : i32
    %20 = tpu.dynamic_rotate %11 by %c241_i32 dim 1 : vector<4x256xf32>, i32 -> vector<4x256xf32>
    %c8 = arith.constant 8 : index
    %c0_7 = arith.constant 0 : index
    %21 = vector.load %arg9[%c8, %c0_7] : memref<72x256xf32, #tpu.memory_space<vmem>>, vector<4x256xf32>
    tpu.vector_store %arg9[%c8, %c0_7], %20 {strides = array<i32>} : memref<72x256xf32, #tpu.memory_space<vmem>>, vector<4x256xf32>,
    %c16_i32 = arith.constant 16 : i32
    %22 = tpu.dynamic_rotate %7 by %c16_i32 dim 1 : vector<4x256xf32>, i32 -> vector<4x256xf32>
    %c12 = arith.constant 12 : index
    %c0_8 = arith.constant 0 : index
    %23 = vector.load %arg9[%c12, %c0_8] : memref<72x256xf32, #tpu.memory_space<vmem>>, vector<4x256xf32>
    tpu.vector_store %arg9[%c12, %c0_8], %22 {strides = array<i32>} : memref<72x256xf32, #tpu.memory_space<vmem>>, vector<4x256xf32>,
    %c16 = arith.constant 16 : index
    %c0_9 = arith.constant 0 : index
    %24 = vector.load %arg9[%c16, %c0_9] : memref<72x256xf32, #tpu.memory_space<vmem>>, vector<4x256xf32>
    tpu.vector_store %arg9[%c16, %c0_9], %7 {strides = array<i32>} : memref<72x256xf32, #tpu.memory_space<vmem>>, vector<4x256xf32>,
    %c240_i32 = arith.constant 240 : i32
    %25 = tpu.dynamic_rotate %7 by %c240_i32 dim 1 : vector<4x256xf32>, i32 -> vector<4x256xf32>
    %c20 = arith.constant 20 : index
    %c0_10 = arith.constant 0 : index
    %26 = vector.load %arg9[%c20, %c0_10] : memref<72x256xf32, #tpu.memory_space<vmem>>, vector<4x256xf32>
    tpu.vector_store %arg9[%c20, %c0_10], %25 {strides = array<i32>} : memref<72x256xf32, #tpu.memory_space<vmem>>, vector<4x256xf32>,
    %c15_i32_11 = arith.constant 15 : i32
    %27 = tpu.dynamic_rotate %15 by %c15_i32_11 dim 1 : vector<4x256xf32>, i32 -> vector<4x256xf32>
    %c24 = arith.constant 24 : index
    %c0_12 = arith.constant 0 : index
    %28 = vector.load %arg9[%c24, %c0_12] : memref<72x256xf32, #tpu.memory_space<vmem>>, vector<4x256xf32>
    tpu.vector_store %arg9[%c24, %c0_12], %27 {strides = array<i32>} : memref<72x256xf32, #tpu.memory_space<vmem>>, vector<4x256xf32>,
    %c255_i32 = arith.constant 255 : i32
    %29 = tpu.dynamic_rotate %15 by %c255_i32 dim 1 : vector<4x256xf32>, i32 -> vector<4x256xf32>
    %c28 = arith.constant 28 : index
    %c0_13 = arith.constant 0 : index
    %30 = vector.load %arg9[%c28, %c0_13] : memref<72x256xf32, #tpu.memory_space<vmem>>, vector<4x256xf32>
    tpu.vector_store %arg9[%c28, %c0_13], %29 {strides = array<i32>} : memref<72x256xf32, #tpu.memory_space<vmem>>, vector<4x256xf32>,
    %c239_i32 = arith.constant 239 : i32
    %31 = tpu.dynamic_rotate %15 by %c239_i32 dim 1 : vector<4x256xf32>, i32 -> vector<4x256xf32>
    %c32 = arith.constant 32 : index
    %c0_14 = arith.constant 0 : index
    %32 = vector.load %arg9[%c32, %c0_14] : memref<72x256xf32, #tpu.memory_space<vmem>>, vector<4x256xf32>
    tpu.vector_store %arg9[%c32, %c0_14], %31 {strides = array<i32>} : memref<72x256xf32, #tpu.memory_space<vmem>>, vector<4x256xf32>,
    %cst_15 = arith.constant 0.000000e+00 : f32
    %33 = vector.broadcast %cst_15 : f32 to vector<4x256xf32>
    %c36 = arith.constant 36 : index
    %c0_16 = arith.constant 0 : index
    %34 = vector.load %arg9[%c36, %c0_16] : memref<72x256xf32, #tpu.memory_space<vmem>>, vector<4x256xf32>
    tpu.vector_store %arg9[%c36, %c0_16], %33 {strides = array<i32>} : memref<72x256xf32, #tpu.memory_space<vmem>>, vector<4x256xf32>,
    %c0_17 = arith.constant 0 : index
    %c0_18 = arith.constant 0 : index
    %35 = vector.load %arg2[%c0_17, %c0_18] : memref<8x40xf32, #tpu.memory_space<vmem>>, vector<8x40xf32>
    %c0_19 = arith.constant 0 : index
    %c0_20 = arith.constant 0 : index
    %36 = vector.load %arg9[%c0_19, %c0_20] : memref<72x256xf32, #tpu.memory_space<vmem>>, vector<40x256xf32>
    %cst_21 = arith.constant dense<0.000000e+00> : vector<8x256xf32>
    %37 = tpu.matmul %35, %36, %cst_21 {dimension_numbers = #tpu.dot_dimension_numbers<[1], [0], [0], [1], [0, 0, 1, 1], [], []>} : vector<8x40xf32>, vector<40x256xf32>, vector<8x256xf32> -> vector<8x256xf32>
    %c0_22 = arith.constant 0 : index
    %c0_23 = arith.constant 0 : index
    %38 = vector.load %arg3[%c0_22, %c0_23] : memref<8x1xf32, #tpu.memory_space<vmem>>, vector<8x1xf32>
    %39 = vector.broadcast %38 : vector<8x1xf32> to vector<8x256xf32>
    %40 = arith.addf %37, %39 : vector<8x256xf32>
    %cst_24 = arith.constant 0.000000e+00 : f32
    %41 = vector.broadcast %cst_24 : f32 to vector<8x256xf32>
    %42 = arith.minimumf %40, %41 : vector<8x256xf32>
    %cst_25 = arith.constant 0.000000e+00 : f32
    %43 = vector.broadcast %cst_25 : f32 to vector<8x256xf32>
    %44 = arith.cmpf ogt, %40, %43 : vector<8x256xf32>
    %45 = math.exp %42 : vector<8x256xf32>
    %cst_26 = arith.constant 1.000000e+00 : f32
    %46 = vector.broadcast %cst_26 : f32 to vector<8x256xf32>
    %47 = arith.subf %45, %46 : vector<8x256xf32>
    %48 = arith.select %44, %40, %47 : vector<8x256xi1>, vector<8x256xf32>
    %cst_27 = arith.constant 0.000000e+00 : f32
    %49 = vector.shape_cast %4 : vector<1x256xi1> to vector<1x256xi1>
    %50 = vector.broadcast %49 : vector<1x256xi1> to vector<8x256xi1>
    %51 = vector.broadcast %cst_27 : f32 to vector<8x256xf32>
    %52 = arith.select %50, %48, %51 : vector<8x256xi1>, vector<8x256xf32>
    %cst_28 = arith.constant 0.000000e+00 : f32
    %53 = vector.shape_cast %6 : vector<1x256xi1> to vector<1x256xi1>
    %54 = vector.broadcast %53 : vector<1x256xi1> to vector<8x256xi1>
    %55 = vector.broadcast %cst_28 : f32 to vector<8x256xf32>
    %56 = arith.select %54, %48, %55 : vector<8x256xi1>, vector<8x256xf32>
    %c17_i32_29 = arith.constant 17 : i32
    %57 = tpu.dynamic_rotate %52 by %c17_i32_29 dim 1 : vector<8x256xf32>, i32 -> vector<8x256xf32>
    %c0_30 = arith.constant 0 : index
    %c0_31 = arith.constant 0 : index
    %58 = vector.load %arg9[%c0_30, %c0_31] : memref<72x256xf32, #tpu.memory_space<vmem>>, vector<8x256xf32>
    tpu.vector_store %arg9[%c0_30, %c0_31], %57 {strides = array<i32>} : memref<72x256xf32, #tpu.memory_space<vmem>>, vector<8x256xf32>,
    %c1_i32_32 = arith.constant 1 : i32
    %59 = tpu.dynamic_rotate %52 by %c1_i32_32 dim 1 : vector<8x256xf32>, i32 -> vector<8x256xf32>
    %c8_33 = arith.constant 8 : index
    %c0_34 = arith.constant 0 : index
    %60 = vector.load %arg9[%c8_33, %c0_34] : memref<72x256xf32, #tpu.memory_space<vmem>>, vector<8x256xf32>
    tpu.vector_store %arg9[%c8_33, %c0_34], %59 {strides = array<i32>} : memref<72x256xf32, #tpu.memory_space<vmem>>, vector<8x256xf32>,
    %c241_i32_35 = arith.constant 241 : i32
    %61 = tpu.dynamic_rotate %52 by %c241_i32_35 dim 1 : vector<8x256xf32>, i32 -> vector<8x256xf32>
    %c16_36 = arith.constant 16 : index
    %c0_37 = arith.constant 0 : index
    %62 = vector.load %arg9[%c16_36, %c0_37] : memref<72x256xf32, #tpu.memory_space<vmem>>, vector<8x256xf32>
    tpu.vector_store %arg9[%c16_36, %c0_37], %61 {strides = array<i32>} : memref<72x256xf32, #tpu.memory_space<vmem>>, vector<8x256xf32>,
    %c16_i32_38 = arith.constant 16 : i32
    %63 = tpu.dynamic_rotate %48 by %c16_i32_38 dim 1 : vector<8x256xf32>, i32 -> vector<8x256xf32>
    %c24_39 = arith.constant 24 : index
    %c0_40 = arith.constant 0 : index
    %64 = vector.load %arg9[%c24_39, %c0_40] : memref<72x256xf32, #tpu.memory_space<vmem>>, vector<8x256xf32>
    tpu.vector_store %arg9[%c24_39, %c0_40], %63 {strides = array<i32>} : memref<72x256xf32, #tpu.memory_space<vmem>>, vector<8x256xf32>,
    %c32_41 = arith.constant 32 : index
    %c0_42 = arith.constant 0 : index
    %65 = vector.load %arg9[%c32_41, %c0_42] : memref<72x256xf32, #tpu.memory_space<vmem>>, vector<8x256xf32>
    tpu.vector_store %arg9[%c32_41, %c0_42], %48 {strides = array<i32>} : memref<72x256xf32, #tpu.memory_space<vmem>>, vector<8x256xf32>,
    %c240_i32_43 = arith.constant 240 : i32
    %66 = tpu.dynamic_rotate %48 by %c240_i32_43 dim 1 : vector<8x256xf32>, i32 -> vector<8x256xf32>
    %c40 = arith.constant 40 : index
    %c0_44 = arith.constant 0 : index
    %67 = vector.load %arg9[%c40, %c0_44] : memref<72x256xf32, #tpu.memory_space<vmem>>, vector<8x256xf32>
    tpu.vector_store %arg9[%c40, %c0_44], %66 {strides = array<i32>} : memref<72x256xf32, #tpu.memory_space<vmem>>, vector<8x256xf32>,
    %c15_i32_45 = arith.constant 15 : i32
    %68 = tpu.dynamic_rotate %56 by %c15_i32_45 dim 1 : vector<8x256xf32>, i32 -> vector<8x256xf32>
    %c48 = arith.constant 48 : index
    %c0_46 = arith.constant 0 : index
    %69 = vector.load %arg9[%c48, %c0_46] : memref<72x256xf32, #tpu.memory_space<vmem>>, vector<8x256xf32>
    tpu.vector_store %arg9[%c48, %c0_46], %68 {strides = array<i32>} : memref<72x256xf32, #tpu.memory_space<vmem>>, vector<8x256xf32>,
    %c255_i32_47 = arith.constant 255 : i32
    %70 = tpu.dynamic_rotate %56 by %c255_i32_47 dim 1 : vector<8x256xf32>, i32 -> vector<8x256xf32>
    %c56 = arith.constant 56 : index
    %c0_48 = arith.constant 0 : index
    %71 = vector.load %arg9[%c56, %c0_48] : memref<72x256xf32, #tpu.memory_space<vmem>>, vector<8x256xf32>
    tpu.vector_store %arg9[%c56, %c0_48], %70 {strides = array<i32>} : memref<72x256xf32, #tpu.memory_space<vmem>>, vector<8x256xf32>,
    %c239_i32_49 = arith.constant 239 : i32
    %72 = tpu.dynamic_rotate %56 by %c239_i32_49 dim 1 : vector<8x256xf32>, i32 -> vector<8x256xf32>
    %c64 = arith.constant 64 : index
    %c0_50 = arith.constant 0 : index
    %73 = vector.load %arg9[%c64, %c0_50] : memref<72x256xf32, #tpu.memory_space<vmem>>, vector<8x256xf32>
    tpu.vector_store %arg9[%c64, %c0_50], %72 {strides = array<i32>} : memref<72x256xf32, #tpu.memory_space<vmem>>, vector<8x256xf32>,
    %c0_51 = arith.constant 0 : index
    %c0_52 = arith.constant 0 : index
    %74 = vector.load %arg4[%c0_51, %c0_52] : memref<8x72xf32, #tpu.memory_space<vmem>>, vector<8x72xf32>
    %c0_53 = arith.constant 0 : index
    %c0_54 = arith.constant 0 : index
    %75 = vector.load %arg9[%c0_53, %c0_54] : memref<72x256xf32, #tpu.memory_space<vmem>>, vector<72x256xf32>
    %cst_55 = arith.constant dense<0.000000e+00> : vector<8x256xf32>
    %76 = tpu.matmul %74, %75, %cst_55 {dimension_numbers = #tpu.dot_dimension_numbers<[1], [0], [0], [1], [0, 0, 1, 1], [], []>} : vector<8x72xf32>, vector<72x256xf32>, vector<8x256xf32> -> vector<8x256xf32>
    %c0_56 = arith.constant 0 : index
    %c0_57 = arith.constant 0 : index
    %77 = vector.load %arg5[%c0_56, %c0_57] : memref<8x1xf32, #tpu.memory_space<vmem>>, vector<8x1xf32>
    %78 = vector.broadcast %77 : vector<8x1xf32> to vector<8x256xf32>
    %79 = arith.addf %76, %78 : vector<8x256xf32>
    %cst_58 = arith.constant 0.000000e+00 : f32
    %80 = vector.broadcast %cst_58 : f32 to vector<8x256xf32>
    %81 = arith.minimumf %79, %80 : vector<8x256xf32>
    %cst_59 = arith.constant 0.000000e+00 : f32
    %82 = vector.broadcast %cst_59 : f32 to vector<8x256xf32>
    %83 = arith.cmpf ogt, %79, %82 : vector<8x256xf32>
    %84 = math.exp %81 : vector<8x256xf32>
    %cst_60 = arith.constant 1.000000e+00 : f32
    %85 = vector.broadcast %cst_60 : f32 to vector<8x256xf32>
    %86 = arith.subf %84, %85 : vector<8x256xf32>
    %87 = arith.select %83, %79, %86 : vector<8x256xi1>, vector<8x256xf32>
    %cst_61 = arith.constant 0.000000e+00 : f32
    %88 = vector.shape_cast %4 : vector<1x256xi1> to vector<1x256xi1>
    %89 = vector.broadcast %88 : vector<1x256xi1> to vector<8x256xi1>
    %90 = vector.broadcast %cst_61 : f32 to vector<8x256xf32>
    %91 = arith.select %89, %87, %90 : vector<8x256xi1>, vector<8x256xf32>
    %cst_62 = arith.constant 0.000000e+00 : f32
    %92 = vector.shape_cast %6 : vector<1x256xi1> to vector<1x256xi1>
    %93 = vector.broadcast %92 : vector<1x256xi1> to vector<8x256xi1>
    %94 = vector.broadcast %cst_62 : f32 to vector<8x256xf32>
    %95 = arith.select %93, %87, %94 : vector<8x256xi1>, vector<8x256xf32>
    %c17_i32_63 = arith.constant 17 : i32
    %96 = tpu.dynamic_rotate %91 by %c17_i32_63 dim 1 : vector<8x256xf32>, i32 -> vector<8x256xf32>
    %c0_64 = arith.constant 0 : index
    %c0_65 = arith.constant 0 : index
    %97 = vector.load %arg9[%c0_64, %c0_65] : memref<72x256xf32, #tpu.memory_space<vmem>>, vector<8x256xf32>
    tpu.vector_store %arg9[%c0_64, %c0_65], %96 {strides = array<i32>} : memref<72x256xf32, #tpu.memory_space<vmem>>, vector<8x256xf32>,
    %c1_i32_66 = arith.constant 1 : i32
    %98 = tpu.dynamic_rotate %91 by %c1_i32_66 dim 1 : vector<8x256xf32>, i32 -> vector<8x256xf32>
    %c8_67 = arith.constant 8 : index
    %c0_68 = arith.constant 0 : index
    %99 = vector.load %arg9[%c8_67, %c0_68] : memref<72x256xf32, #tpu.memory_space<vmem>>, vector<8x256xf32>
    tpu.vector_store %arg9[%c8_67, %c0_68], %98 {strides = array<i32>} : memref<72x256xf32, #tpu.memory_space<vmem>>, vector<8x256xf32>,
    %c241_i32_69 = arith.constant 241 : i32
    %100 = tpu.dynamic_rotate %91 by %c241_i32_69 dim 1 : vector<8x256xf32>, i32 -> vector<8x256xf32>
    %c16_70 = arith.constant 16 : index
    %c0_71 = arith.constant 0 : index
    %101 = vector.load %arg9[%c16_70, %c0_71] : memref<72x256xf32, #tpu.memory_space<vmem>>, vector<8x256xf32>
    tpu.vector_store %arg9[%c16_70, %c0_71], %100 {strides = array<i32>} : memref<72x256xf32, #tpu.memory_space<vmem>>, vector<8x256xf32>,
    %c16_i32_72 = arith.constant 16 : i32
    %102 = tpu.dynamic_rotate %87 by %c16_i32_72 dim 1 : vector<8x256xf32>, i32 -> vector<8x256xf32>
    %c24_73 = arith.constant 24 : index
    %c0_74 = arith.constant 0 : index
    %103 = vector.load %arg9[%c24_73, %c0_74] : memref<72x256xf32, #tpu.memory_space<vmem>>, vector<8x256xf32>
    tpu.vector_store %arg9[%c24_73, %c0_74], %102 {strides = array<i32>} : memref<72x256xf32, #tpu.memory_space<vmem>>, vector<8x256xf32>,
    %c32_75 = arith.constant 32 : index
    %c0_76 = arith.constant 0 : index
    %104 = vector.load %arg9[%c32_75, %c0_76] : memref<72x256xf32, #tpu.memory_space<vmem>>, vector<8x256xf32>
    tpu.vector_store %arg9[%c32_75, %c0_76], %87 {strides = array<i32>} : memref<72x256xf32, #tpu.memory_space<vmem>>, vector<8x256xf32>,
    %c240_i32_77 = arith.constant 240 : i32
    %105 = tpu.dynamic_rotate %87 by %c240_i32_77 dim 1 : vector<8x256xf32>, i32 -> vector<8x256xf32>
    %c40_78 = arith.constant 40 : index
    %c0_79 = arith.constant 0 : index
    %106 = vector.load %arg9[%c40_78, %c0_79] : memref<72x256xf32, #tpu.memory_space<vmem>>, vector<8x256xf32>
    tpu.vector_store %arg9[%c40_78, %c0_79], %105 {strides = array<i32>} : memref<72x256xf32, #tpu.memory_space<vmem>>, vector<8x256xf32>,
    %c15_i32_80 = arith.constant 15 : i32
    %107 = tpu.dynamic_rotate %95 by %c15_i32_80 dim 1 : vector<8x256xf32>, i32 -> vector<8x256xf32>
    %c48_81 = arith.constant 48 : index
    %c0_82 = arith.constant 0 : index
    %108 = vector.load %arg9[%c48_81, %c0_82] : memref<72x256xf32, #tpu.memory_space<vmem>>, vector<8x256xf32>
    tpu.vector_store %arg9[%c48_81, %c0_82], %107 {strides = array<i32>} : memref<72x256xf32, #tpu.memory_space<vmem>>, vector<8x256xf32>,
    %c255_i32_83 = arith.constant 255 : i32
    %109 = tpu.dynamic_rotate %95 by %c255_i32_83 dim 1 : vector<8x256xf32>, i32 -> vector<8x256xf32>
    %c56_84 = arith.constant 56 : index
    %c0_85 = arith.constant 0 : index
    %110 = vector.load %arg9[%c56_84, %c0_85] : memref<72x256xf32, #tpu.memory_space<vmem>>, vector<8x256xf32>
    tpu.vector_store %arg9[%c56_84, %c0_85], %109 {strides = array<i32>} : memref<72x256xf32, #tpu.memory_space<vmem>>, vector<8x256xf32>,
    %c239_i32_86 = arith.constant 239 : i32
    %111 = tpu.dynamic_rotate %95 by %c239_i32_86 dim 1 : vector<8x256xf32>, i32 -> vector<8x256xf32>
    %c64_87 = arith.constant 64 : index
    %c0_88 = arith.constant 0 : index
    %112 = vector.load %arg9[%c64_87, %c0_88] : memref<72x256xf32, #tpu.memory_space<vmem>>, vector<8x256xf32>
    tpu.vector_store %arg9[%c64_87, %c0_88], %111 {strides = array<i32>} : memref<72x256xf32, #tpu.memory_space<vmem>>, vector<8x256xf32>,
    %c0_89 = arith.constant 0 : index
    %c0_90 = arith.constant 0 : index
    %113 = vector.load %arg6[%c0_89, %c0_90] : memref<4x72xf32, #tpu.memory_space<vmem>>, vector<4x72xf32>
    %c0_91 = arith.constant 0 : index
    %c0_92 = arith.constant 0 : index
    %114 = vector.load %arg9[%c0_91, %c0_92] : memref<72x256xf32, #tpu.memory_space<vmem>>, vector<72x256xf32>
    %cst_93 = arith.constant dense<0.000000e+00> : vector<4x256xf32>
    %115 = tpu.matmul %113, %114, %cst_93 {dimension_numbers = #tpu.dot_dimension_numbers<[1], [0], [0], [1], [0, 0, 1, 1], [], []>} : vector<4x72xf32>, vector<72x256xf32>, vector<4x256xf32> -> vector<4x256xf32>
    %c0_94 = arith.constant 0 : index
    %c0_95 = arith.constant 0 : index
    %116 = vector.load %arg7[%c0_94, %c0_95] : memref<4x1xf32, #tpu.memory_space<vmem>>, vector<4x1xf32>
    %117 = vector.broadcast %116 : vector<4x1xf32> to vector<4x256xf32>
    %118 = arith.addf %115, %117 : vector<4x256xf32>
    %c0_96 = arith.constant 0 : index
    %c0_97 = arith.constant 0 : index
    %119 = vector.load %arg8[%c0_96, %c0_97] : memref<4x256xf32, #tpu.memory_space<vmem>>, vector<4x256xf32>
    tpu.vector_store %arg8[%c0_96, %c0_97], %118 {strides = array<i32>} : memref<4x256xf32, #tpu.memory_space<vmem>>, vector<4x256xf32>,
    return
  }
  func.func @transform_0(%arg0: i32) -> (i32, i32) {
    %c0_i32 = arith.constant 0 : i32
    %c0_i32_0 = arith.constant 0 : i32
    return %c0_i32, %arg0 : i32, i32
  }
  func.func @transform_1(%arg0: i32) -> (i32, i32) {
    %c0_i32 = arith.constant 0 : i32
    %c0_i32_0 = arith.constant 0 : i32
    %c0_i32_1 = arith.constant 0 : i32
    return %c0_i32, %c0_i32_0 : i32, i32
  }
  func.func @transform_2(%arg0: i32) -> (i32, i32) {
    %c0_i32 = arith.constant 0 : i32
    %c0_i32_0 = arith.constant 0 : i32
    %c0_i32_1 = arith.constant 0 : i32
    return %c0_i32, %c0_i32_0 : i32, i32
  }
  func.func @transform_3(%arg0: i32) -> (i32, i32) {
    %c0_i32 = arith.constant 0 : i32
    %c0_i32_0 = arith.constant 0 : i32
    %c0_i32_1 = arith.constant 0 : i32
    return %c0_i32, %c0_i32_0 : i32, i32
  }
  func.func @transform_4(%arg0: i32) -> (i32, i32) {
    %c0_i32 = arith.constant 0 : i32
    %c0_i32_0 = arith.constant 0 : i32
    %c0_i32_1 = arith.constant 0 : i32
    return %c0_i32, %c0_i32_0 : i32, i32
  }
  func.func @transform_5(%arg0: i32) -> (i32, i32) {
    %c0_i32 = arith.constant 0 : i32
    %c0_i32_0 = arith.constant 0 : i32
    %c0_i32_1 = arith.constant 0 : i32
    return %c0_i32, %c0_i32_0 : i32, i32
  }
  func.func @transform_6(%arg0: i32) -> (i32, i32) {
    %c0_i32 = arith.constant 0 : i32
    %c0_i32_0 = arith.constant 0 : i32
    %c0_i32_1 = arith.constant 0 : i32
    return %c0_i32, %c0_i32_0 : i32, i32
  }
  func.func @transform_7(%arg0: i32) -> (i32, i32) {
    %c0_i32 = arith.constant 0 : i32
    %c0_i32_0 = arith.constant 0 : i32
    return %c0_i32, %arg0 : i32, i32
  }
}

</mosaic_0001>

<bundles_post_ra>
// kernel: periodic_cnn_forward.1
= control target key start
LH: loop header
LB: loop body
LE: loop exit
PB: predicated region body
PF: predicated region fallthrough
CT: control target
= control target key end

     0   :  { %s1068_s24 = smov 0   ;;  %s1336_s0 = inlined_call_operand.vmem [shape: f32[4,512], index: 0, kind: input, shape index: {}]   ;;  %s1337_s1 = inlined_call_operand.vmem [shape: f32[8,40], index: 1, kind: input, shape index: {}]   ;;  %s1338_s2 = inlined_call_operand.vmem [shape: f32[8,1], index: 2, kind: input, shape index: {}]   ;;  %s1339_s3 = inlined_call_operand.vmem [shape: f32[8,72], index: 3, kind: input, shape index: {}]   ;;  %s1340_s4 = inlined_call_operand.vmem [shape: f32[8,1], index: 4, kind: input, shape index: {}]   ;;  %s1341_s5 = inlined_call_operand.vmem [shape: f32[4,72], index: 5, kind: input, shape index: {}]   ;;  %s1342_s6 = inlined_call_operand.vmem [shape: f32[4,1], index: 6, kind: input, shape index: {}]   ;;  %s1343_s7 = inlined_call_operand.vmem [shape: f32[4,512], index: 7, kind: output, shape index: {}]  }
   0x1 LB: > { %s923_s25 = sadd.s32 4294967295, %s1016_s24   ;;  %p927_p0 = scmp.ge.s32.totalorder %s1016_s24, 1  ;;  %s1016_s24 = sphi %s1068_s24, %s17_s24  }
   0x2   : > { %p238_p1 = scmp.lt.s32.totalorder %s1016_s24, 3 }
   0x4   : > { %p239_p2 = pnand %p927_p0, %p238_p1 }
   0x5   : > { %s928_s26 = sshll.u32 (!%p239_p2), %s923_s25, 1  ;;  %v282_v0 = vlaneseq (!%p239_p2)  ;;  %s1018_s8 = smov (!%p239_p2), 16   ;;  %v1023_v15 = vmov (!%p239_p2), 0.0   ;;  %v1027_v16 = vmov (!%p239_p2), 0   ;;  %v418_v17 = vld [vmem:[%s1338_s2] sm:$0xff] (!%p239_p2)  ;;  %vm424_vm12 = vcmask (!%p239_p2), 326656  }
   0x6   : > { %242 = sbr.rel (%p239_p2) target bundleno = 1158 (0x486), region = 48  ;;  %p271_p3 = scmp.lt.s32.totalorder (!%p239_p2), %s928_s26, 3  ;;  %406 = vst [vmem:[#allocation2 + $0x48] sm:$0xf0] (!%p239_p2), %v1023_v15  ;;  %405 = vst [vmem:[#allocation2 + $0x40] sm:$0xf0] (!%p239_p2), %v1023_v15  ;;  %492 = vmatprep.mubr.f32.mxu0 (!%p239_p2), %v1023_v15  ;;  %674 = vmatprep.mubr.f32.mxu1 (!%p239_p2), %v1023_v15 }
   0x7   : > { %v1076_v1 = vand.u32 (!%p239_p2), 127, %v282_v0  ;;  %s1019_s9 = smov (!%p239_p2), 1   ;;  %s1020_s10 = smov (!%p239_p2), 17   ;;  %999 = vset.pattern.permute.xlu0 (!%p239_p2), %v1027_v16  ;;  %1000 = vset.pattern.permute.xlu1 (!%p239_p2), %v1027_v16  ;;  %vm606_vm15 = vcmask (!%p239_p2), 588800   ;;  %v782_v12 = vld [vmem:[%s1342_s6] sm:$0xf] (!%p239_p2) }
   0x8   : > { %s1021_s11 = smov (!%p239_p2), 113   ;;  %s1022_s12 = smov (!%p239_p2), 112  }
   0x9   : > { %v285_v2 = vand.u32 (!%p239_p2), 15, %v1076_v1  ;;  %v284_v3 = vadd.s32 (!%p239_p2), 128, %v1076_v1  ;;  %s1024_s13 = smov (!%p239_p2), 127   ;;  %s1025_s14 = smov (!%p239_p2), 15   ;;  %vm344_vm4 = vcmp.lt.s32.totalorder (!%p239_p2), %v1076_v1, 16  ;;  %vm311_vm5 = vcmp.lt.s32.totalorder (!%p239_p2), %v1076_v1, 17 }
   0xa   : > { %s1026_s15 = smov (!%p239_p2), 111   ;;  %vm320_vm6 = vcmp.lt.s32.totalorder (!%p239_p2), %v1076_v1, 1  ;;  %vm335_vm7 = vcmp.lt.s32.totalorder (!%p239_p2), %v1076_v1, 113  ;;  %vm361_vm8 = vcmp.lt.s32.totalorder (!%p239_p2), %v1076_v1, 112  ;;  %vm385_vm9 = vcmp.lt.s32.totalorder (!%p239_p2), %v1076_v1, 127 }
   0xb   : > { %vm1088_vm0 = vcmp.lt.s32.totalorder (!%p239_p2), %v285_v2, 15  ;;  %v286_v5 = vand.u32 (!%p239_p2), 15, %v284_v3  ;;  %vm1112_vm3 = vcmp.ge.s32.totalorder (!%p239_p2), %v285_v2, 1  ;;  %vm376_vm10 = vcmp.lt.s32.totalorder (!%p239_p2), %v1076_v1, 15 }
   0xc   : > { %vm400_vm11 = vcmp.lt.s32.totalorder (!%p239_p2), %v1076_v1, 111 }
   0xd   : > { %s1353_s26 = smov (!%p271_p3, %s928_s26), 3  ;;  %vm1096_vm1 = vcmp.lt.s32.totalorder %v286_v5, 15  ;;  %vm1108_vm2 = vcmp.ge.s32.totalorder %v286_v5, 1 }
   0xe   : > { %s929_s27 = sshll.u32 %s1353_s26, 2 }
   0xf   : > { %s274_s30 = scalar_lea.vmem %s1336_s0, %s929_s27 }
  0x10   : > { %v291_v6 = vld [vmem:[%s274_s30] sm:$0xff] }
  0x11   : > { %340 = vrot.lane.b32.xlu1 %v291_v6, %s1018_s8  ;;  %355 = vst [vmem:[#allocation2 + $0x20] sm:$0xf] %v291_v6  ;;  %v299_v7 = vsel %vm1088_vm0, %v291_v6, 0.0  ;;  %v297_v8 = vcombine.high %v291_v6, %v291_v6  ;;  %v305_v14 = vsel %vm1112_vm3, %v291_v6, 0.0 }
  0x12   : > { %316 = vrot.lane.b32.xlu0 %v299_v7, %s1019_s9 }
  0x13   : > { %356 = vst [vmem:[#allocation2 + $0x28] sm:$0xf] %v297_v8  ;;  %v300_v10 = vsel %vm1096_vm1, %v297_v8, 0.0  ;;  %v306_v13 = vsel %vm1108_vm2, %v297_v8, 0.0 }
  0x15   : > { %342 = vrot.lane.b32.xlu1 %v297_v8, %s1018_s8 }
  0x16   : > { %307 = vrot.lane.b32.xlu0 %v299_v7, %s1020_s10 }
  0x19   : > { %309 = vrot.lane.b32.xlu1 %v300_v10, %s1020_s10 }
  0x1a   : > { %318 = vrot.lane.b32.xlu0 %v300_v10, %s1019_s9 }
  0x1d   : > { %333 = vrot.lane.b32.xlu1 %v300_v10, %s1021_s11 }
  0x1e   : > { %331 = vrot.lane.b32.xlu0 %v299_v7, %s1021_s11 }
  0x21   : > { %359 = vrot.lane.b32.xlu1 %v297_v8, %s1022_s12 }
  0x22   : > { %357 = vrot.lane.b32.xlu0 %v291_v6, %s1022_s12 }
  0x25   : > { %383 = vrot.lane.b32.xlu1 %v306_v13, %s1024_s13 }
  0x26   : > { %381 = vrot.lane.b32.xlu0 %v305_v14, %s1024_s13 }
  0x29   : > { %374 = vrot.lane.b32.xlu1 %v306_v13, %s1025_s14 }
  0x2a   : > { %372 = vrot.lane.b32.xlu0 %v305_v14, %s1025_s14 }
  0x2d   : > { %398 = vrot.lane.b32.xlu1 %v306_v13, %s1026_s15  ;;  %v407_v13 = vld [vmem:[%s1337_s1] sm:$0xff] }
  0x2e   : > { %396 = vrot.lane.b32.xlu0 %v305_v14, %s1026_s15 }
  0x32   : > { %421 = vperm.xlu0 %999, %v418_v17  }
  0x83   : > { %v341_v18 = vpop.permute.xlu1 %340 }
  0x84   : > { %v317_v19 = vpop.permute.xlu0 %316 }
  0x87   : > { %v343_v20 = vpop.permute.xlu1 %342 }
  0x88   : > { %v345_v21 = vsel %vm344_vm4, %v341_v18, %v343_v20  ;;  %v346_v22 = vsel %vm344_vm4, %v343_v20, %v341_v18  ;;  %v308_v23 = vpop.permute.xlu0 %307 }
  0x89   : > { %v349_v24 = vrot.slane %v346_v22, 4  ;;  %v350_v25 = vrot.slane %v345_v21, 4 }
  0x8b   : > { %353 = vst [vmem:[#allocation2 + $0x10] sm:$0xf0] %v349_v24  ;;  %354 = vst [vmem:[#allocation2 + $0x18] sm:$0xf0] %v350_v25  ;;  %v310_v26 = vpop.permute.xlu1 %309 }
  0x8c   : > { %v312_v27 = vsel %vm311_vm5, %v308_v23, %v310_v26  ;;  %v313_v28 = vsel %vm311_vm5, %v310_v26, %v308_v23  ;;  %v319_v29 = vpop.permute.xlu0 %318 }
  0x8d   : > { %314 = vst [vmem:[#allocation2] sm:$0xf] %v313_v28  ;;  %315 = vst [vmem:[#allocation2 + $0x8] sm:$0xf] %v312_v27  ;;  %v321_v30 = vsel %vm320_vm6, %v317_v19, %v319_v29  ;;  %v322_v31 = vsel %vm320_vm6, %v319_v29, %v317_v19 }
  0x8e   : > { %v325_v32 = vrot.slane %v322_v31, 4  ;;  %v326_v33 = vrot.slane %v321_v30, 4 }
  0x8f   : > { %v334_v34 = vpop.permute.xlu1 %333 }
  0x90   : > { %329 = vst [vmem:[#allocation2] sm:$0xf0] %v325_v32  ;;  %330 = vst [vmem:[#allocation2 + $0x8] sm:$0xf0] %v326_v33  ;;  %v332_v35 = vpop.permute.xlu0 %331  ;;  %v600_v33 = vld [vmem:[%s1340_s4] sm:$0xff] }
  0x91   : > { %v336_v36 = vsel %vm335_vm7, %v332_v35, %v334_v34  ;;  %v337_v37 = vsel %vm335_vm7, %v334_v34, %v332_v35 }
  0x92   : > { %338 = vst [vmem:[#allocation2 + $0x10] sm:$0xf] %v336_v36  ;;  %339 = vst [vmem:[#allocation2 + $0x18] sm:$0xf] %v337_v37 }
  0x93   : > { %v360_v38 = vpop.permute.xlu1 %359 }
  0x94   : > { %v358_v39 = vpop.permute.xlu0 %357 }
  0x95   : > { %v362_v40 = vsel %vm361_vm8, %v358_v39, %v360_v38  ;;  %v363_v41 = vsel %vm361_vm8, %v360_v38, %v358_v39 }
  0x96   : > { %v366_v42 = vrot.slane %v362_v40, 4  ;;  %v367_v43 = vrot.slane %v363_v41, 4 }
  0x97   : > { %v384_v44 = vpop.permute.xlu1 %383  ;;  %v409_v46 = vld [vmem:[#allocation2 + $0x8] sm:$0xff]  ;;  %v408_v50 = vld [vmem:[#allocation2] sm:$0xff] }
  0x98   : > { %370 = vst [vmem:[#allocation2 + $0x20] sm:$0xf0] %v366_v42  ;;  %371 = vst [vmem:[#allocation2 + $0x28] sm:$0xf0] %v367_v43  ;;  %v382_v45 = vpop.permute.xlu0 %381 }
  0x99   : > { %v386_v47 = vsel %vm385_vm9, %v382_v45, %v384_v44  ;;  %v387_v48 = vsel %vm385_vm9, %v384_v44, %v382_v45  ;;  %v411_v49 = vld [vmem:[#allocation2 + $0x18] sm:$0xff]  ;;  %v410_v51 = vld [vmem:[#allocation2 + $0x10] sm:$0xff] }
  0x9a   : > { %v390_v52 = vrot.slane %v386_v47, 4  ;;  %v391_v53 = vrot.slane %v387_v48, 4  ;;  %v941_v54 = vpack.c.bf16 %v411_v49, %v409_v46  ;;  %v943_v55 = vpack.c.bf16 %v410_v51, %v408_v50 }
  0x9b   : > { %v375_v56 = vpop.permute.xlu1 %374 }
  0x9c   : > { %394 = vst [vmem:[#allocation2 + $0x30] sm:$0xf0] %v390_v52  ;;  %395 = vst [vmem:[#allocation2 + $0x38] sm:$0xf0] %v391_v53  ;;  %942 = vmatprep.subr.bf16.mxu0 %v941_v54  ;;  %v373_v57 = vpop.permute.xlu0 %372 }
  0x9d   : > { %v377_v58 = vsel %vm376_vm10, %v373_v57, %v375_v56  ;;  %v378_v59 = vsel %vm376_vm10, %v375_v56, %v373_v57  ;;  %944 = vmatpush1.bf16.msra.mxu0 %v943_v55 }
  0x9e   : > { %379 = vst [vmem:[#allocation2 + $0x30] sm:$0xf] %v378_v59  ;;  %380 = vst [vmem:[#allocation2 + $0x38] sm:$0xf] %v377_v58 }
  0x9f   : > { %v399_v60 = vpop.permute.xlu1 %398  ;;  %v413_v0 = vld [vmem:[#allocation2 + $0x28] sm:$0xff]  ;;  %v412_v3 = vld [vmem:[#allocation2 + $0x20] sm:$0xff] }
  0xa0   : > { %v397_v61 = vpop.permute.xlu0 %396 }
  0xa1   : > { %v401_v62 = vsel %vm400_vm11, %v397_v61, %v399_v60  ;;  %v402_v63 = vsel %vm400_vm11, %v399_v60, %v397_v61 }
  0xa2   : > { %403 = vst [vmem:[#allocation2 + $0x40] sm:$0xf] %v401_v62  ;;  %404 = vst [vmem:[#allocation2 + $0x48] sm:$0xf] %v402_v63 }
  0xa5   : > { %v415_v2 = vld [vmem:[#allocation2 + $0x38] sm:$0xff]  ;;  %v414_v5 = vld [vmem:[#allocation2 + $0x30] sm:$0xff] }
  0xa6   : > { %v945_v6 = vpack.c.bf16 %v415_v2, %v413_v0  ;;  %v947_v7 = vpack.c.bf16 %v414_v5, %v412_v3 }
  0xa8   : > { %946 = vmatprep.subr.bf16.mxu0 %v945_v6 }
  0xa9   : > { %948 = vmatpush1.bf16.msra.mxu0 %v947_v7  ;;  %v417_v8 = vld [vmem:[#allocation2 + $0x48] sm:$0xff]  ;;  %v416_v10 = vld [vmem:[#allocation2 + $0x40] sm:$0xff] }
  0xaa   : > { %436 = vmatprep.subr.mxu0 %v417_v8 }
  0xad   : > { %437 = vmatpush1.msra.mxu0 %v416_v10 }
  0xae   : > { %932 = vmatmul.mubr.msk.f32.vlgmr.msra.gmra.mrb[0].mxu0 %vm424_vm12, %v407_v13 }
  0xaf   : > { %855 = vmatprep.mubr.f32.mxu0 %v1023_v15 }
  0xb1   : > { %v422_v14 = vpop.permute.xlu0 %421 }
 0x181   : > { %v494_v16 = vpop.f32.mrb[0].mxu0 }
 0x182   : > { %v495_v17 = vadd.f32 %v494_v16, %v422_v14  ;;  %v496_v18 = vpop.f32.mrb[1].mxu0 }
 0x183   : > { %v497_v19 = vadd.f32 %v496_v18, %v422_v14  ;;  %v581_v14 = vld [vmem:[%s1339_s3] sm:$0xff] }
 0x184   : > { %v499_v20 = vmin.f32 %v495_v17, 0.0  ;;  %vm501_vm13 = vcmp.gt.f32.partialorder %v495_v17, 0.0 }
 0x185   : > { %v500_v21 = vmin.f32 %v497_v19, 0.0  ;;  %vm502_vm14 = vcmp.gt.f32.partialorder %v497_v19, 0.0 }
 0x186   : > { %v503_v22 = vmul.f32 1.442695, %v499_v20 }
 0x187   : > { %v505_v23 = vmul.f32 1.442695, %v500_v21 }
 0x188   : > { %1002 = vpow2.f32 %v503_v22 }
 0x189   : > { %1004 = vpow2.f32 %v505_v23 }
 0x192   : > { %v1003_v24 = vpop.eup %1002 }
 0x193   : > { %v1005_v25 = vpop.eup %1004  ;;  %v933_v26 = vadd.f32 -1.0, %v1003_v24 }
 0x194   : > { %v934_v28 = vadd.f32 -1.0, %v1005_v25 }
 0x195   : > { %v1179_v27 = vsel %vm501_vm13, %v495_v17, %v933_v26 }
 0x196   : > { %539 = vrot.lane.b32.xlu0 %v1179_v27, %s1018_s8  ;;  %v511_v15 = vsel %vm1088_vm0, %v1179_v27, 0.0  ;;  %v510_v29 = vsel %vm502_vm14, %v497_v19, %v934_v28  ;;  %v513_v31 = vsel %vm1112_vm3, %v1179_v27, 0.0 }
 0x197   : > { %515 = vrot.lane.b32.xlu1 %v511_v15, %s1020_s10  ;;  %v512_v30 = vsel %vm1096_vm1, %v510_v29, 0.0  ;;  %v514_v32 = vsel %vm1108_vm2, %v510_v29, 0.0 }
 0x19a   : > { %549 = vrot.lane.b32.xlu0 %v1179_v27, %s1022_s12 }
 0x19b   : > { %541 = vrot.lane.b32.xlu1 %v510_v29, %s1018_s8 }
 0x19e   : > { %523 = vrot.lane.b32.xlu0 %v511_v15, %s1019_s9 }
 0x19f   : > { %551 = vrot.lane.b32.xlu1 %v510_v29, %s1022_s12 }
 0x1a2   : > { %531 = vrot.lane.b32.xlu0 %v511_v15, %s1021_s11 }
 0x1a3   : > { %517 = vrot.lane.b32.xlu1 %v512_v30, %s1020_s10 }
 0x1a6   : > { %557 = vrot.lane.b32.xlu0 %v513_v31, %s1025_s14 }
 0x1a7   : > { %525 = vrot.lane.b32.xlu1 %v512_v30, %s1019_s9 }
 0x1aa   : > { %565 = vrot.lane.b32.xlu0 %v513_v31, %s1024_s13 }
 0x1ab   : > { %533 = vrot.lane.b32.xlu1 %v512_v30, %s1021_s11 }
 0x1ae   : > { %573 = vrot.lane.b32.xlu0 %v513_v31, %s1026_s15 }
 0x1af   : > { %559 = vrot.lane.b32.xlu1 %v514_v32, %s1025_s14 }
 0x1b2   : > { %603 = vperm.xlu0 %999, %v600_v33  }
 0x1b3   : > { %567 = vrot.lane.b32.xlu1 %v514_v32, %s1024_s13 }
 0x1b7   : > { %575 = vrot.lane.b32.xlu1 %v514_v32, %s1026_s15 }
 0x208   : > { %v540_v34 = vpop.permute.xlu0 %539 }
 0x209   : > { %v516_v35 = vpop.permute.xlu1 %515 }
 0x20c   : > { %v550_v36 = vpop.permute.xlu0 %549 }
 0x20d   : > { %v542_v37 = vpop.permute.xlu1 %541 }
 0x20e   : > { %v543_v49 = vsel %vm344_vm4, %v540_v34, %v542_v37  ;;  %v544_v52 = vsel %vm344_vm4, %v542_v37, %v540_v34 }
 0x210   : > { %v524_v38 = vpop.permute.xlu0 %523 }
 0x211   : > { %v552_v39 = vpop.permute.xlu1 %551 }
 0x212   : > { %v554_v53 = vsel %vm361_vm8, %v552_v39, %v550_v36  ;;  %v553_v58 = vsel %vm361_vm8, %v550_v36, %v552_v39 }
 0x213   : > { %v957_v60 = vpack.c.bf16 %v554_v53, %v510_v29  ;;  %v959_v62 = vpack.c.bf16 %v553_v58, %v1179_v27 }
 0x214   : > { %v532_v41 = vpop.permute.xlu0 %531 }
 0x215   : > { %v518_v40 = vpop.permute.xlu1 %517 }
 0x216   : > { %v519_v43 = vsel %vm311_vm5, %v516_v35, %v518_v40  ;;  %v520_v44 = vsel %vm311_vm5, %v518_v40, %v516_v35 }
 0x218   : > { %v558_v50 = vpop.permute.xlu0 %557 }
 0x219   : > { %v526_v42 = vpop.permute.xlu1 %525 }
 0x21a   : > { %v527_v45 = vsel %vm320_vm6, %v524_v38, %v526_v42  ;;  %v528_v46 = vsel %vm320_vm6, %v526_v42, %v524_v38 }
 0x21b   : > { %v949_v47 = vpack.c.bf16 %v527_v45, %v519_v43  ;;  %v951_v48 = vpack.c.bf16 %v528_v46, %v520_v44 }
 0x21c   : > { %v566_v61 = vpop.permute.xlu0 %565 }
 0x21d   : > { %v534_v51 = vpop.permute.xlu1 %533  ;;  %950 = vmatprep.subr.bf16.mxu1 %v949_v47 }
 0x21e   : > { %v535_v54 = vsel %vm335_vm7, %v532_v41, %v534_v51  ;;  %v536_v55 = vsel %vm335_vm7, %v534_v51, %v532_v41  ;;  %952 = vmatpush1.bf16.msra.mxu1 %v951_v48 }
 0x21f   : > { %v953_v56 = vpack.c.bf16 %v543_v49, %v536_v55  ;;  %v955_v57 = vpack.c.bf16 %v544_v52, %v535_v54 }
 0x220   : > { %v574_v8 = vpop.permute.xlu0 %573 }
 0x221   : > { %v560_v59 = vpop.permute.xlu1 %559  ;;  %954 = vmatprep.subr.bf16.mxu1 %v953_v56 }
 0x222   : > { %956 = vmatpush1.bf16.msra.mxu1 %v955_v57  ;;  %v561_v0 = vsel %vm376_vm10, %v558_v50, %v560_v59  ;;  %v562_v2 = vsel %vm376_vm10, %v560_v59, %v558_v50 }
 0x223   : > { %958 = vmatprep.subr.bf16.mxu1 %v957_v60 }
 0x225   : > { %v568_v63 = vpop.permute.xlu1 %567 }
 0x226   : > { %v569_v3 = vsel %vm385_vm9, %v566_v61, %v568_v63  ;;  %v570_v5 = vsel %vm385_vm9, %v568_v63, %v566_v61  ;;  %960 = vmatpush1.bf16.msra.mxu1 %v959_v62 }
 0x227   : > { %v961_v6 = vpack.c.bf16 %v570_v5, %v561_v0  ;;  %v963_v7 = vpack.c.bf16 %v569_v3, %v562_v2 }
 0x229   : > { %v576_v10 = vpop.permute.xlu1 %575  ;;  %962 = vmatprep.subr.bf16.mxu1 %v961_v6 }
 0x22a   : > { %v578_v13 = vsel %vm400_vm11, %v576_v10, %v574_v8  ;;  %964 = vmatpush1.bf16.msra.mxu1 %v963_v7  ;;  %v577_v16 = vsel %vm400_vm11, %v574_v8, %v576_v10 }
 0x22b   : > { %626 = vmatprep.subr.mxu1 %v578_v13  ;;  %v763_v13 = vld [vmem:[%s1341_s5] sm:$0xf] }
 0x22e   : > { %627 = vmatpush1.msra.mxu1 %v577_v16 }
 0x22f   : > { %935 = vmatmul.mubr.msk.f32.vlgmr.msra.gmra.mrb[0].mxu1 %vm606_vm15, %v581_v14 }
 0x231   : > { %v604_v17 = vpop.permute.xlu0 %603 }
 0x302   : > { %v676_v18 = vpop.f32.mrb[0].mxu1 }
 0x303   : > { %v677_v19 = vadd.f32 %v676_v18, %v604_v17  ;;  %v678_v20 = vpop.f32.mrb[1].mxu1 }
 0x304   : > { %v679_v21 = vadd.f32 %v678_v20, %v604_v17 }
 0x305   : > { %v681_v22 = vmin.f32 %v677_v19, 0.0  ;;  %vm683_vm12 = vcmp.gt.f32.partialorder %v677_v19, 0.0 }
 0x306   : > { %v682_v23 = vmin.f32 %v679_v21, 0.0  ;;  %vm684_vm13 = vcmp.gt.f32.partialorder %v679_v21, 0.0 }
 0x307   : > { %v685_v24 = vmul.f32 1.442695, %v681_v22 }
 0x308   : > { %v687_v25 = vmul.f32 1.442695, %v682_v23 }
 0x309   : > { %1006 = vpow2.f32 %v685_v24 }
 0x30a   : > { %1008 = vpow2.f32 %v687_v25 }
 0x313   : > { %v1007_v26 = vpop.eup %1006 }
 0x314   : > { %v1009_v27 = vpop.eup %1008  ;;  %v936_v28 = vadd.f32 -1.0, %v1007_v26 }
 0x315   : > { %v937_v15 = vadd.f32 -1.0, %v1009_v27 }
 0x316   : > { %v1249_v29 = vsel %vm683_vm12, %v677_v19, %v936_v28 }
 0x317   : > { %729 = vst [vmem:[#allocation2 + $0x40] sm:$0xff] %v1249_v29  ;;  %v1252_v30 = vsel %vm684_vm13, %v679_v21, %v937_v15  ;;  %721 = vrot.lane.b32.xlu1 %v1249_v29, %s1018_s8  ;;  %v693_v31 = vsel %vm1088_vm0, %v1249_v29, 0.0  ;;  %v695_v4 = vsel %vm1112_vm3, %v1249_v29, 0.0 }
 0x318   : > { %730 = vst [vmem:[#allocation2 + $0x48] sm:$0xff] %v1252_v30  ;;  %723 = vrot.lane.b32.xlu0 %v1252_v30, %s1018_s8  ;;  %v694_v32 = vsel %vm1096_vm1, %v1252_v30, 0.0  ;;  %v696_v9 = vsel %vm1108_vm2, %v1252_v30, 0.0 }
 0x31b   : > { %731 = vrot.lane.b32.xlu1 %v1249_v29, %s1022_s12 }
 0x31c   : > { %733 = vrot.lane.b32.xlu0 %v1252_v30, %s1022_s12 }
 0x31f   : > { %697 = vrot.lane.b32.xlu1 %v693_v31, %s1020_s10 }
 0x320   : > { %699 = vrot.lane.b32.xlu0 %v694_v32, %s1020_s10  ;;  %s280_s10 = scalar_lea.vmem %s1343_s7, %s929_s27 }
 0x323   : > { %705 = vrot.lane.b32.xlu1 %v693_v31, %s1019_s9 }
 0x324   : > { %707 = vrot.lane.b32.xlu0 %v694_v32, %s1019_s9 }
 0x327   : > { %713 = vrot.lane.b32.xlu1 %v693_v31, %s1021_s11 }
 0x328   : > { %715 = vrot.lane.b32.xlu0 %v694_v32, %s1021_s11 }
 0x32b   : > { %739 = vrot.lane.b32.xlu1 %v695_v4, %s1025_s14 }
 0x32c   : > { %741 = vrot.lane.b32.xlu0 %v696_v9, %s1025_s14 }
 0x32f   : > { %747 = vrot.lane.b32.xlu1 %v695_v4, %s1024_s13 }
 0x330   : > { %749 = vrot.lane.b32.xlu0 %v696_v9, %s1024_s13 }
 0x333   : > { %755 = vrot.lane.b32.xlu1 %v695_v4, %s1026_s15 }
 0x334   : > { %757 = vrot.lane.b32.xlu0 %v696_v9, %s1026_s15 }
 0x337   : > { %785 = vperm.xlu1 %1000, %v782_v12  }
 0x389   : > { %v722_v33 = vpop.permute.xlu1 %721 }
 0x38a   : > { %v724_v34 = vpop.permute.xlu0 %723 }
 0x38b   : > { %v725_v11 = vsel %vm344_vm4, %v722_v33, %v724_v34  ;;  %v726_v35 = vsel %vm344_vm4, %v724_v34, %v722_v33 }
 0x38c   : > { %727 = vst [vmem:[#allocation2 + $0x30] sm:$0xff] %v726_v35  ;;  %728 = vst [vmem:[#allocation2 + $0x38] sm:$0xff] %v725_v11 }
 0x38d   : > { %v732_v36 = vpop.permute.xlu1 %731 }
 0x38e   : > { %v734_v37 = vpop.permute.xlu0 %733 }
 0x38f   : > { %v735_v38 = vsel %vm361_vm8, %v732_v36, %v734_v37  ;;  %v736_v39 = vsel %vm361_vm8, %v734_v37, %v732_v36 }
 0x390   : > { %v973_v58 = vpack.c.bf16 %v736_v39, %v1252_v30  ;;  %v975_v62 = vpack.c.bf16 %v735_v38, %v1249_v29 }
 0x391   : > { %v698_v40 = vpop.permute.xlu1 %697 }
 0x392   : > { %v700_v41 = vpop.permute.xlu0 %699 }
 0x393   : > { %v701_v42 = vsel %vm311_vm5, %v698_v40, %v700_v41  ;;  %v702_v43 = vsel %vm311_vm5, %v700_v41, %v698_v40 }
 0x394   : > { %703 = vst [vmem:[#allocation2] sm:$0xff] %v702_v43  ;;  %704 = vst [vmem:[#allocation2 + $0x8] sm:$0xff] %v701_v42 }
 0x395   : > { %v706_v44 = vpop.permute.xlu1 %705 }
 0x396   : > { %v708_v45 = vpop.permute.xlu0 %707 }
 0x397   : > { %v709_v46 = vsel %vm320_vm6, %v706_v44, %v708_v45  ;;  %v710_v47 = vsel %vm320_vm6, %v708_v45, %v706_v44 }
 0x398   : > { %711 = vst [vmem:[#allocation2 + $0x10] sm:$0xff] %v710_v47  ;;  %712 = vst [vmem:[#allocation2 + $0x18] sm:$0xff] %v709_v46  ;;  %v965_v48 = vpack.c.bf16 %v709_v46, %v701_v42  ;;  %v967_v49 = vpack.c.bf16 %v710_v47, %v702_v43 }
 0x399   : > { %v714_v50 = vpop.permute.xlu1 %713 }
 0x39a   : > { %v716_v51 = vpop.permute.xlu0 %715  ;;  %966 = vmatprep.subr.bf16.mxu0 %v965_v48 }
 0x39b   : > { %v717_v52 = vsel %vm335_vm7, %v714_v50, %v716_v51  ;;  %v718_v53 = vsel %vm335_vm7, %v716_v51, %v714_v50  ;;  %968 = vmatpush1.bf16.msra.mxu0 %v967_v49 }
 0x39c   : > { %719 = vst [vmem:[#allocation2 + $0x20] sm:$0xff] %v717_v52  ;;  %720 = vst [vmem:[#allocation2 + $0x28] sm:$0xff] %v718_v53  ;;  %v969_v54 = vpack.c.bf16 %v725_v11, %v718_v53  ;;  %v971_v55 = vpack.c.bf16 %v726_v35, %v717_v52 }
 0x39d   : > { %v740_v56 = vpop.permute.xlu1 %739 }
 0x39e   : > { %v742_v57 = vpop.permute.xlu0 %741  ;;  %970 = vmatprep.subr.bf16.mxu0 %v969_v54 }
 0x39f   : > { %v743_v59 = vsel %vm376_vm10, %v740_v56, %v742_v57  ;;  %v744_v60 = vsel %vm376_vm10, %v742_v57, %v740_v56  ;;  %972 = vmatpush1.bf16.msra.mxu0 %v971_v55 }
 0x3a0   : > { %974 = vmatprep.subr.bf16.mxu0 %v973_v58 }
 0x3a1   : > { %v748_v61 = vpop.permute.xlu1 %747 }
 0x3a2   : > { %v750_v63 = vpop.permute.xlu0 %749 }
 0x3a3   : > { %v751_v0 = vsel %vm385_vm9, %v748_v61, %v750_v63  ;;  %v752_v2 = vsel %vm385_vm9, %v750_v63, %v748_v61  ;;  %976 = vmatpush1.bf16.msra.mxu0 %v975_v62 }
 0x3a4   : > { %v977_v3 = vpack.c.bf16 %v752_v2, %v743_v59  ;;  %v979_v5 = vpack.c.bf16 %v751_v0, %v744_v60 }
 0x3a5   : > { %v756_v6 = vpop.permute.xlu1 %755 }
 0x3a6   : > { %v758_v7 = vpop.permute.xlu0 %757  ;;  %978 = vmatprep.subr.bf16.mxu0 %v977_v3 }
 0x3a7   : > { %v759_v8 = vsel %vm400_vm11, %v756_v6, %v758_v7  ;;  %v760_v10 = vsel %vm400_vm11, %v758_v7, %v756_v6  ;;  %980 = vmatpush1.bf16.msra.mxu0 %v979_v5 }
 0x3a8   : > { %807 = vmatprep.subr.mxu0 %v760_v10 }
 0x3ab   : > { %808 = vmatpush1.msra.mxu0 %v759_v8 }
 0x3ac   : > { %938 = vmatmul.mubr.msk.f32.vlgmr.msra.gmra.mrb[2].mxu0 %vm606_vm15, %v763_v13 }
 0x3b6   : > { %v786_v14 = vpop.permute.xlu1 %785 }
 0x47f   : > { %v857_v16 = vpop.f32.mrb[2].mxu0 }
 0x480   : > { %v858_v17 = vadd.f32 %v857_v16, %v786_v14  ;;  %v859_v18 = vpop.f32.mrb[3].mxu0 }
 0x481   : > { %v860_v19 = vadd.f32 %v859_v18, %v786_v14 }
 0x483   : > { %v864_v1 = vcombine.low %v858_v17, %v860_v19 }
 0x485   : > { %866 = vst [vmem:[%s280_s10] sm:$0xff] %v864_v1 }
 0x486 PF: > { %s17_s24 = sadd.s32 1, %s1016_s24  }
 0x487   : > { %p14_p4 = scmp.ge.s32.totalorder %s17_s24, 4  }
 0x489   :  { %16 = sbr.rel (!%p14_p4) target bundleno = 1 (0x1), region = 78 }

</bundles_post_ra>
